<compile_context>
chip_gen: v7x
topology: tpu7x:2x2x1
jax: 0.10.0
libtpu: 0.0.40
codegen_flags: <defaults>
</compile_context>

<pallas_src>
import jax
import jax.numpy as jnp
from jax.experimental import pallas as pl
from jax.experimental.pallas import tpu as pltpu


def gru_fc_kernel(x_ref, wi_ref, wh_ref, slab_ref, out_ref):
    """x_ref: (T*B, I) time-major; wi_ref: (I, 3H); wh_ref: (H, 3H);
    slab_ref: (2, 3H) packed small params; out_ref: (B, 1)."""
    TB, _ = x_ref.shape
    H = wh_ref.shape[0]
    B = out_ref.shape[0]
    T = TB // B

    w_h = wh_ref[...]                                    # (H, 3H), held in vregs across steps
    slab = slab_ref[...]                                 # (2, 3H)
    b_cat = slab[0:1, :]                                 # (1, 3H) = [b_ir+b_hr | b_iz+b_hz | b_in]
    b_hn = jnp.broadcast_to(slab[1:2, 0:H], (B, H))      # hidden-side n-gate bias (broadcast once)
    w_fc = jnp.broadcast_to(slab[1:2, H:2 * H], (B, H))  # Linear weight row (broadcast once)
    b_fc = slab[1:2, 2 * H:2 * H + 1]                    # (1, 1) Linear bias

    # Hoisted input projection for all timesteps: one MXU call, off the serial chain.
    g_in = jnp.dot(x_ref[...], wi_ref[...],
                   preferred_element_type=jnp.float32) + b_cat      # (T*B, 3H)

    h = jnp.zeros((B, H), jnp.float32)
    for t in range(T):                                   # static trip count -> fully unrolled
        gi = g_in[t * B:(t + 1) * B, :]                  # (B, 3H) static, sublane-aligned slice
        gh = jnp.dot(h, w_h, preferred_element_type=jnp.float32)    # (B, 3H): the only serial matmul
        # r and z in a single wide sigmoid (one EUP push on (B, 2H)).
        rz = jax.nn.sigmoid(gi[:, 0:2 * H] + gh[:, 0:2 * H])
        r = rz[:, 0:H]
        z = rz[:, H:2 * H]
        n = jnp.tanh(gi[:, 2 * H:] + r * (gh[:, 2 * H:] + b_hn))
        h = n + z * (h - n)                              # == (1 - z) * n + z * h

    # Linear(H, 1): elementwise multiply + cross-lane reduction (XLU), no tiny matmul.
    out_ref[...] = jnp.sum(h * w_fc, axis=-1, keepdims=True) + b_fc


def rnn_forward(x, params):
    """x: (B, T, I) f32, batch_first (as in the PyTorch module). Returns (B, 1)."""
    B, T, I = x.shape
    # Time-major flat layout so per-timestep slices inside the kernel are contiguous,
    # sublane-aligned row blocks (B == 8 == one sublane group).
    x_tm = jnp.transpose(x, (1, 0, 2)).reshape(T * B, I)

    vmem = pl.BlockSpec(memory_space=pltpu.MemorySpace.VMEM)
    return pl.pallas_call(
        gru_fc_kernel,
        out_shape=jax.ShapeDtypeStruct((B, 1), jnp.float32),
        in_specs=[vmem, vmem, vmem, vmem],
        out_specs=vmem,
    )(x_tm, params["w_icat"], params["w_hcat"], params["slab"])


def make_params(key, input_size, hidden_size):
    """PyTorch-style U(-1/sqrt(H), 1/sqrt(H)) init, then fuse/pack for the kernel."""
    I, H = input_size, hidden_size
    k = 1.0 / jnp.sqrt(jnp.float32(H))
    keys = jax.random.split(key, 6)

    # PyTorch layouts: weight_ih_l0 (3H, I), weight_hh_l0 (3H, H), biases (3H,), order [r, z, n].
    w_ih = jax.random.uniform(keys[0], (3 * H, I), jnp.float32, -k, k)
    w_hh = jax.random.uniform(keys[1], (3 * H, H), jnp.float32, -k, k)
    b_ih = jax.random.uniform(keys[2], (3 * H,), jnp.float32, -k, k)
    b_hh = jax.random.uniform(keys[3], (3 * H,), jnp.float32, -k, k)
    w_fc = jax.random.uniform(keys[4], (1, H), jnp.float32, -k, k)
    b_fc = jax.random.uniform(keys[5], (1,), jnp.float32, -k, k)

    # Fused gate weights: column blocks [r | z | n].
    w_icat = w_ih.T                                       # (I, 3H)
    w_hcat = w_hh.T                                       # (H, 3H)

    # Merged biases: r/z gates take input+hidden bias up front; n gate keeps b_hn separate
    # because PyTorch applies it inside r * (h @ W_hn + b_hn).
    b_cat = jnp.concatenate([
        b_ih[:H] + b_hh[:H],            # r
        b_ih[H:2 * H] + b_hh[H:2 * H],  # z
        b_ih[2 * H:],                   # n (input-side only)
    ])

    # Pack all remaining small params into one (2, 3H) slab -> 4 kernel args total.
    slab = jnp.zeros((2, 3 * H), jnp.float32)
    slab = slab.at[0, :].set(b_cat)
    slab = slab.at[1, :H].set(b_hh[2 * H:])               # b_hn
    slab = slab.at[1, H:2 * H].set(w_fc[0])               # fc weight row
    slab = slab.at[1, 2 * H].set(b_fc[0])                 # fc bias

    return {
        "w_icat": w_icat, "w_hcat": w_hcat, "slab": slab,
        "raw": {"w_ih": w_ih, "w_hh": w_hh, "b_ih": b_ih, "b_hh": b_hh,
                "w_fc": w_fc, "b_fc": b_fc},
    }


def rnn_reference(x, raw):
    """Pure-JAX GRU + Linear forward from the unpacked PyTorch-layout parameters."""
    B, T, I = x.shape
    H = raw["w_hh"].shape[1]
    w_ih, w_hh, b_ih, b_hh = raw["w_ih"], raw["w_hh"], raw["b_ih"], raw["b_hh"]
    wir, wiz, win = w_ih[:H].T, w_ih[H:2 * H].T, w_ih[2 * H:].T
    whr, whz, whn = w_hh[:H].T, w_hh[H:2 * H].T, w_hh[2 * H:].T
    bir, biz, bin_ = b_ih[:H], b_ih[H:2 * H], b_ih[2 * H:]
    bhr, bhz, bhn = b_hh[:H], b_hh[H:2 * H], b_hh[2 * H:]

    h = jnp.zeros((B, H), jnp.float32)
    for t in range(T):
        x_t = x[:, t, :]
        r = jax.nn.sigmoid(x_t @ wir + bir + h @ whr + bhr)
        z = jax.nn.sigmoid(x_t @ wiz + biz + h @ whz + bhz)
        n = jnp.tanh(x_t @ win + bin_ + r * (h @ whn + bhn))
        h = (1.0 - z) * n + z * h
    return h @ raw["w_fc"].T + raw["b_fc"]


if __name__ == "__main__":
    B, T, I, H = 8, 8, 16, 32

    key = jax.random.PRNGKey(0)
    k_x, k_p = jax.random.split(key)
    x = jax.random.normal(k_x, (B, T, I), jnp.float32)
    params = make_params(k_p, I, H)

    out = rnn_forward(x, params)
    out = jax.block_until_ready(out)
    assert out.shape == (B, 1), out.shape

    ref = rnn_reference(x, params["raw"])
    err = float(jnp.max(jnp.abs(out - ref)))
    assert jnp.allclose(out, ref, rtol=1e-4, atol=1e-4), err

    print("KERNEL_OK")
</pallas_src>

<mosaic_0001>
module attributes {stable_mosaic.version = 11 : i64} {
  func.func @gru_fc_kernel(%arg0: memref<64x16xf32, #tpu.memory_space<vmem>>, %arg1: memref<16x96xf32, #tpu.memory_space<vmem>>, %arg2: memref<32x96xf32, #tpu.memory_space<vmem>>, %arg3: memref<2x96xf32, #tpu.memory_space<vmem>>, %arg4: memref<8x1xf32, #tpu.memory_space<vmem>>) attributes {dimension_semantics = [], scalar_prefetch = 0 : i64, scratch_operands = 0 : i64, tpu.core_type = #tpu.core_type<tc>} {
    %c0 = arith.constant 0 : index
    %c0_0 = arith.constant 0 : index
    %0 = vector.load %arg2[%c0, %c0_0] : memref<32x96xf32, #tpu.memory_space<vmem>>, vector<32x96xf32>
    %c0_1 = arith.constant 0 : index
    %c0_2 = arith.constant 0 : index
    %1 = vector.load %arg3[%c0_1, %c0_2] : memref<2x96xf32, #tpu.memory_space<vmem>>, vector<2x96xf32>
    %2 = vector.extract_strided_slice %1 {offsets = [0, 0], sizes = [1, 96], strides = [1, 1]} : vector<2x96xf32> to vector<1x96xf32>
    %3 = vector.extract_strided_slice %1 {offsets = [1, 0], sizes = [1, 32], strides = [1, 1]} : vector<2x96xf32> to vector<1x32xf32>
    %4 = vector.shape_cast %3 : vector<1x32xf32> to vector<1x32xf32>
    %5 = vector.broadcast %4 : vector<1x32xf32> to vector<8x32xf32>
    %6 = vector.extract_strided_slice %1 {offsets = [1, 32], sizes = [1, 32], strides = [1, 1]} : vector<2x96xf32> to vector<1x32xf32>
    %7 = vector.shape_cast %6 : vector<1x32xf32> to vector<1x32xf32>
    %8 = vector.broadcast %7 : vector<1x32xf32> to vector<8x32xf32>
    %9 = vector.extract_strided_slice %1 {offsets = [1, 64], sizes = [1, 1], strides = [1, 1]} : vector<2x96xf32> to vector<1x1xf32>
    %c0_3 = arith.constant 0 : index
    %c0_4 = arith.constant 0 : index
    %10 = vector.load %arg0[%c0_3, %c0_4] : memref<64x16xf32, #tpu.memory_space<vmem>>, vector<64x16xf32>
    %c0_5 = arith.constant 0 : index
    %c0_6 = arith.constant 0 : index
    %11 = vector.load %arg1[%c0_5, %c0_6] : memref<16x96xf32, #tpu.memory_space<vmem>>, vector<16x96xf32>
    %cst = arith.constant dense<0.000000e+00> : vector<64x96xf32>
    %12 = tpu.matmul %10, %11, %cst {dimension_numbers = #tpu.dot_dimension_numbers<[1], [0], [0], [1], [0, 0, 1, 1], [], []>} : vector<64x16xf32>, vector<16x96xf32>, vector<64x96xf32> -> vector<64x96xf32>
    %13 = vector.broadcast %2 : vector<1x96xf32> to vector<64x96xf32>
    %14 = arith.addf %12, %13 : vector<64x96xf32>
    %cst_7 = arith.constant 0.000000e+00 : f32
    %15 = vector.broadcast %cst_7 : f32 to vector<8x32xf32>
    %16 = vector.extract_strided_slice %14 {offsets = [0, 0], sizes = [8, 96], strides = [1, 1]} : vector<64x96xf32> to vector<8x96xf32>
    %cst_8 = arith.constant dense<0.000000e+00> : vector<8x96xf32>
    %17 = tpu.matmul %15, %0, %cst_8 {dimension_numbers = #tpu.dot_dimension_numbers<[1], [0], [0], [1], [0, 0, 1, 1], [], []>} : vector<8x32xf32>, vector<32x96xf32>, vector<8x96xf32> -> vector<8x96xf32>
    %18 = vector.extract_strided_slice %16 {offsets = [0, 0], sizes = [8, 64], strides = [1, 1]} : vector<8x96xf32> to vector<8x64xf32>
    %19 = vector.extract_strided_slice %17 {offsets = [0, 0], sizes = [8, 64], strides = [1, 1]} : vector<8x96xf32> to vector<8x64xf32>
    %20 = arith.addf %18, %19 : vector<8x64xf32>
    %21 = arith.negf %20 : vector<8x64xf32>
    %22 = math.exp %21 : vector<8x64xf32>
    %cst_9 = arith.constant 1.000000e+00 : f32
    %23 = vector.broadcast %cst_9 : f32 to vector<8x64xf32>
    %24 = arith.addf %23, %22 : vector<8x64xf32>
    %25 = arith.divf %23, %24 : vector<8x64xf32>
    %26 = vector.extract_strided_slice %25 {offsets = [0, 0], sizes = [8, 32], strides = [1, 1]} : vector<8x64xf32> to vector<8x32xf32>
    %27 = vector.extract_strided_slice %25 {offsets = [0, 32], sizes = [8, 32], strides = [1, 1]} : vector<8x64xf32> to vector<8x32xf32>
    %28 = vector.extract_strided_slice %16 {offsets = [0, 64], sizes = [8, 32], strides = [1, 1]} : vector<8x96xf32> to vector<8x32xf32>
    %29 = vector.extract_strided_slice %17 {offsets = [0, 64], sizes = [8, 32], strides = [1, 1]} : vector<8x96xf32> to vector<8x32xf32>
    %30 = arith.addf %29, %5 : vector<8x32xf32>
    %31 = arith.mulf %26, %30 : vector<8x32xf32>
    %32 = arith.addf %28, %31 : vector<8x32xf32>
    %33 = math.tanh %32 : vector<8x32xf32>
    %34 = arith.subf %15, %33 : vector<8x32xf32>
    %35 = arith.mulf %27, %34 : vector<8x32xf32>
    %36 = arith.addf %33, %35 : vector<8x32xf32>
    %37 = vector.extract_strided_slice %14 {offsets = [8, 0], sizes = [8, 96], strides = [1, 1]} : vector<64x96xf32> to vector<8x96xf32>
    %cst_10 = arith.constant dense<0.000000e+00> : vector<8x96xf32>
    %38 = tpu.matmul %36, %0, %cst_10 {dimension_numbers = #tpu.dot_dimension_numbers<[1], [0], [0], [1], [0, 0, 1, 1], [], []>} : vector<8x32xf32>, vector<32x96xf32>, vector<8x96xf32> -> vector<8x96xf32>
    %39 = vector.extract_strided_slice %37 {offsets = [0, 0], sizes = [8, 64], strides = [1, 1]} : vector<8x96xf32> to vector<8x64xf32>
    %40 = vector.extract_strided_slice %38 {offsets = [0, 0], sizes = [8, 64], strides = [1, 1]} : vector<8x96xf32> to vector<8x64xf32>
    %41 = arith.addf %39, %40 : vector<8x64xf32>
    %42 = arith.negf %41 : vector<8x64xf32>
    %43 = math.exp %42 : vector<8x64xf32>
    %cst_11 = arith.constant 1.000000e+00 : f32
    %44 = vector.broadcast %cst_11 : f32 to vector<8x64xf32>
    %45 = arith.addf %44, %43 : vector<8x64xf32>
    %46 = arith.divf %44, %45 : vector<8x64xf32>
    %47 = vector.extract_strided_slice %46 {offsets = [0, 0], sizes = [8, 32], strides = [1, 1]} : vector<8x64xf32> to vector<8x32xf32>
    %48 = vector.extract_strided_slice %46 {offsets = [0, 32], sizes = [8, 32], strides = [1, 1]} : vector<8x64xf32> to vector<8x32xf32>
    %49 = vector.extract_strided_slice %37 {offsets = [0, 64], sizes = [8, 32], strides = [1, 1]} : vector<8x96xf32> to vector<8x32xf32>
    %50 = vector.extract_strided_slice %38 {offsets = [0, 64], sizes = [8, 32], strides = [1, 1]} : vector<8x96xf32> to vector<8x32xf32>
    %51 = arith.addf %50, %5 : vector<8x32xf32>
    %52 = arith.mulf %47, %51 : vector<8x32xf32>
    %53 = arith.addf %49, %52 : vector<8x32xf32>
    %54 = math.tanh %53 : vector<8x32xf32>
    %55 = arith.subf %36, %54 : vector<8x32xf32>
    %56 = arith.mulf %48, %55 : vector<8x32xf32>
    %57 = arith.addf %54, %56 : vector<8x32xf32>
    %58 = vector.extract_strided_slice %14 {offsets = [16, 0], sizes = [8, 96], strides = [1, 1]} : vector<64x96xf32> to vector<8x96xf32>
    %cst_12 = arith.constant dense<0.000000e+00> : vector<8x96xf32>
    %59 = tpu.matmul %57, %0, %cst_12 {dimension_numbers = #tpu.dot_dimension_numbers<[1], [0], [0], [1], [0, 0, 1, 1], [], []>} : vector<8x32xf32>, vector<32x96xf32>, vector<8x96xf32> -> vector<8x96xf32>
    %60 = vector.extract_strided_slice %58 {offsets = [0, 0], sizes = [8, 64], strides = [1, 1]} : vector<8x96xf32> to vector<8x64xf32>
    %61 = vector.extract_strided_slice %59 {offsets = [0, 0], sizes = [8, 64], strides = [1, 1]} : vector<8x96xf32> to vector<8x64xf32>
    %62 = arith.addf %60, %61 : vector<8x64xf32>
    %63 = arith.negf %62 : vector<8x64xf32>
    %64 = math.exp %63 : vector<8x64xf32>
    %cst_13 = arith.constant 1.000000e+00 : f32
    %65 = vector.broadcast %cst_13 : f32 to vector<8x64xf32>
    %66 = arith.addf %65, %64 : vector<8x64xf32>
    %67 = arith.divf %65, %66 : vector<8x64xf32>
    %68 = vector.extract_strided_slice %67 {offsets = [0, 0], sizes = [8, 32], strides = [1, 1]} : vector<8x64xf32> to vector<8x32xf32>
    %69 = vector.extract_strided_slice %67 {offsets = [0, 32], sizes = [8, 32], strides = [1, 1]} : vector<8x64xf32> to vector<8x32xf32>
    %70 = vector.extract_strided_slice %58 {offsets = [0, 64], sizes = [8, 32], strides = [1, 1]} : vector<8x96xf32> to vector<8x32xf32>
    %71 = vector.extract_strided_slice %59 {offsets = [0, 64], sizes = [8, 32], strides = [1, 1]} : vector<8x96xf32> to vector<8x32xf32>
    %72 = arith.addf %71, %5 : vector<8x32xf32>
    %73 = arith.mulf %68, %72 : vector<8x32xf32>
    %74 = arith.addf %70, %73 : vector<8x32xf32>
    %75 = math.tanh %74 : vector<8x32xf32>
    %76 = arith.subf %57, %75 : vector<8x32xf32>
    %77 = arith.mulf %69, %76 : vector<8x32xf32>
    %78 = arith.addf %75, %77 : vector<8x32xf32>
    %79 = vector.extract_strided_slice %14 {offsets = [24, 0], sizes = [8, 96], strides = [1, 1]} : vector<64x96xf32> to vector<8x96xf32>
    %cst_14 = arith.constant dense<0.000000e+00> : vector<8x96xf32>
    %80 = tpu.matmul %78, %0, %cst_14 {dimension_numbers = #tpu.dot_dimension_numbers<[1], [0], [0], [1], [0, 0, 1, 1], [], []>} : vector<8x32xf32>, vector<32x96xf32>, vector<8x96xf32> -> vector<8x96xf32>
    %81 = vector.extract_strided_slice %79 {offsets = [0, 0], sizes = [8, 64], strides = [1, 1]} : vector<8x96xf32> to vector<8x64xf32>
    %82 = vector.extract_strided_slice %80 {offsets = [0, 0], sizes = [8, 64], strides = [1, 1]} : vector<8x96xf32> to vector<8x64xf32>
    %83 = arith.addf %81, %82 : vector<8x64xf32>
    %84 = arith.negf %83 : vector<8x64xf32>
    %85 = math.exp %84 : vector<8x64xf32>
    %cst_15 = arith.constant 1.000000e+00 : f32
    %86 = vector.broadcast %cst_15 : f32 to vector<8x64xf32>
    %87 = arith.addf %86, %85 : vector<8x64xf32>
    %88 = arith.divf %86, %87 : vector<8x64xf32>
    %89 = vector.extract_strided_slice %88 {offsets = [0, 0], sizes = [8, 32], strides = [1, 1]} : vector<8x64xf32> to vector<8x32xf32>
    %90 = vector.extract_strided_slice %88 {offsets = [0, 32], sizes = [8, 32], strides = [1, 1]} : vector<8x64xf32> to vector<8x32xf32>
    %91 = vector.extract_strided_slice %79 {offsets = [0, 64], sizes = [8, 32], strides = [1, 1]} : vector<8x96xf32> to vector<8x32xf32>
    %92 = vector.extract_strided_slice %80 {offsets = [0, 64], sizes = [8, 32], strides = [1, 1]} : vector<8x96xf32> to vector<8x32xf32>
    %93 = arith.addf %92, %5 : vector<8x32xf32>
    %94 = arith.mulf %89, %93 : vector<8x32xf32>
    %95 = arith.addf %91, %94 : vector<8x32xf32>
    %96 = math.tanh %95 : vector<8x32xf32>
    %97 = arith.subf %78, %96 : vector<8x32xf32>
    %98 = arith.mulf %90, %97 : vector<8x32xf32>
    %99 = arith.addf %96, %98 : vector<8x32xf32>
    %100 = vector.extract_strided_slice %14 {offsets = [32, 0], sizes = [8, 96], strides = [1, 1]} : vector<64x96xf32> to vector<8x96xf32>
    %cst_16 = arith.constant dense<0.000000e+00> : vector<8x96xf32>
    %101 = tpu.matmul %99, %0, %cst_16 {dimension_numbers = #tpu.dot_dimension_numbers<[1], [0], [0], [1], [0, 0, 1, 1], [], []>} : vector<8x32xf32>, vector<32x96xf32>, vector<8x96xf32> -> vector<8x96xf32>
    %102 = vector.extract_strided_slice %100 {offsets = [0, 0], sizes = [8, 64], strides = [1, 1]} : vector<8x96xf32> to vector<8x64xf32>
    %103 = vector.extract_strided_slice %101 {offsets = [0, 0], sizes = [8, 64], strides = [1, 1]} : vector<8x96xf32> to vector<8x64xf32>
    %104 = arith.addf %102, %103 : vector<8x64xf32>
    %105 = arith.negf %104 : vector<8x64xf32>
    %106 = math.exp %105 : vector<8x64xf32>
    %cst_17 = arith.constant 1.000000e+00 : f32
    %107 = vector.broadcast %cst_17 : f32 to vector<8x64xf32>
    %108 = arith.addf %107, %106 : vector<8x64xf32>
    %109 = arith.divf %107, %108 : vector<8x64xf32>
    %110 = vector.extract_strided_slice %109 {offsets = [0, 0], sizes = [8, 32], strides = [1, 1]} : vector<8x64xf32> to vector<8x32xf32>
    %111 = vector.extract_strided_slice %109 {offsets = [0, 32], sizes = [8, 32], strides = [1, 1]} : vector<8x64xf32> to vector<8x32xf32>
    %112 = vector.extract_strided_slice %100 {offsets = [0, 64], sizes = [8, 32], strides = [1, 1]} : vector<8x96xf32> to vector<8x32xf32>
    %113 = vector.extract_strided_slice %101 {offsets = [0, 64], sizes = [8, 32], strides = [1, 1]} : vector<8x96xf32> to vector<8x32xf32>
    %114 = arith.addf %113, %5 : vector<8x32xf32>
    %115 = arith.mulf %110, %114 : vector<8x32xf32>
    %116 = arith.addf %112, %115 : vector<8x32xf32>
    %117 = math.tanh %116 : vector<8x32xf32>
    %118 = arith.subf %99, %117 : vector<8x32xf32>
    %119 = arith.mulf %111, %118 : vector<8x32xf32>
    %120 = arith.addf %117, %119 : vector<8x32xf32>
    %121 = vector.extract_strided_slice %14 {offsets = [40, 0], sizes = [8, 96], strides = [1, 1]} : vector<64x96xf32> to vector<8x96xf32>
    %cst_18 = arith.constant dense<0.000000e+00> : vector<8x96xf32>
    %122 = tpu.matmul %120, %0, %cst_18 {dimension_numbers = #tpu.dot_dimension_numbers<[1], [0], [0], [1], [0, 0, 1, 1], [], []>} : vector<8x32xf32>, vector<32x96xf32>, vector<8x96xf32> -> vector<8x96xf32>
    %123 = vector.extract_strided_slice %121 {offsets = [0, 0], sizes = [8, 64], strides = [1, 1]} : vector<8x96xf32> to vector<8x64xf32>
    %124 = vector.extract_strided_slice %122 {offsets = [0, 0], sizes = [8, 64], strides = [1, 1]} : vector<8x96xf32> to vector<8x64xf32>
    %125 = arith.addf %123, %124 : vector<8x64xf32>
    %126 = arith.negf %125 : vector<8x64xf32>
    %127 = math.exp %126 : vector<8x64xf32>
    %cst_19 = arith.constant 1.000000e+00 : f32
    %128 = vector.broadcast %cst_19 : f32 to vector<8x64xf32>
    %129 = arith.addf %128, %127 : vector<8x64xf32>
    %130 = arith.divf %128, %129 : vector<8x64xf32>
    %131 = vector.extract_strided_slice %130 {offsets = [0, 0], sizes = [8, 32], strides = [1, 1]} : vector<8x64xf32> to vector<8x32xf32>
    %132 = vector.extract_strided_slice %130 {offsets = [0, 32], sizes = [8, 32], strides = [1, 1]} : vector<8x64xf32> to vector<8x32xf32>
    %133 = vector.extract_strided_slice %121 {offsets = [0, 64], sizes = [8, 32], strides = [1, 1]} : vector<8x96xf32> to vector<8x32xf32>
    %134 = vector.extract_strided_slice %122 {offsets = [0, 64], sizes = [8, 32], strides = [1, 1]} : vector<8x96xf32> to vector<8x32xf32>
    %135 = arith.addf %134, %5 : vector<8x32xf32>
    %136 = arith.mulf %131, %135 : vector<8x32xf32>
    %137 = arith.addf %133, %136 : vector<8x32xf32>
    %138 = math.tanh %137 : vector<8x32xf32>
    %139 = arith.subf %120, %138 : vector<8x32xf32>
    %140 = arith.mulf %132, %139 : vector<8x32xf32>
    %141 = arith.addf %138, %140 : vector<8x32xf32>
    %142 = vector.extract_strided_slice %14 {offsets = [48, 0], sizes = [8, 96], strides = [1, 1]} : vector<64x96xf32> to vector<8x96xf32>
    %cst_20 = arith.constant dense<0.000000e+00> : vector<8x96xf32>
    %143 = tpu.matmul %141, %0, %cst_20 {dimension_numbers = #tpu.dot_dimension_numbers<[1], [0], [0], [1], [0, 0, 1, 1], [], []>} : vector<8x32xf32>, vector<32x96xf32>, vector<8x96xf32> -> vector<8x96xf32>
    %144 = vector.extract_strided_slice %142 {offsets = [0, 0], sizes = [8, 64], strides = [1, 1]} : vector<8x96xf32> to vector<8x64xf32>
    %145 = vector.extract_strided_slice %143 {offsets = [0, 0], sizes = [8, 64], strides = [1, 1]} : vector<8x96xf32> to vector<8x64xf32>
    %146 = arith.addf %144, %145 : vector<8x64xf32>
    %147 = arith.negf %146 : vector<8x64xf32>
    %148 = math.exp %147 : vector<8x64xf32>
    %cst_21 = arith.constant 1.000000e+00 : f32
    %149 = vector.broadcast %cst_21 : f32 to vector<8x64xf32>
    %150 = arith.addf %149, %148 : vector<8x64xf32>
    %151 = arith.divf %149, %150 : vector<8x64xf32>
    %152 = vector.extract_strided_slice %151 {offsets = [0, 0], sizes = [8, 32], strides = [1, 1]} : vector<8x64xf32> to vector<8x32xf32>
    %153 = vector.extract_strided_slice %151 {offsets = [0, 32], sizes = [8, 32], strides = [1, 1]} : vector<8x64xf32> to vector<8x32xf32>
    %154 = vector.extract_strided_slice %142 {offsets = [0, 64], sizes = [8, 32], strides = [1, 1]} : vector<8x96xf32> to vector<8x32xf32>
    %155 = vector.extract_strided_slice %143 {offsets = [0, 64], sizes = [8, 32], strides = [1, 1]} : vector<8x96xf32> to vector<8x32xf32>
    %156 = arith.addf %155, %5 : vector<8x32xf32>
    %157 = arith.mulf %152, %156 : vector<8x32xf32>
    %158 = arith.addf %154, %157 : vector<8x32xf32>
    %159 = math.tanh %158 : vector<8x32xf32>
    %160 = arith.subf %141, %159 : vector<8x32xf32>
    %161 = arith.mulf %153, %160 : vector<8x32xf32>
    %162 = arith.addf %159, %161 : vector<8x32xf32>
    %163 = vector.extract_strided_slice %14 {offsets = [56, 0], sizes = [8, 96], strides = [1, 1]} : vector<64x96xf32> to vector<8x96xf32>
    %cst_22 = arith.constant dense<0.000000e+00> : vector<8x96xf32>
    %164 = tpu.matmul %162, %0, %cst_22 {dimension_numbers = #tpu.dot_dimension_numbers<[1], [0], [0], [1], [0, 0, 1, 1], [], []>} : vector<8x32xf32>, vector<32x96xf32>, vector<8x96xf32> -> vector<8x96xf32>
    %165 = vector.extract_strided_slice %163 {offsets = [0, 0], sizes = [8, 64], strides = [1, 1]} : vector<8x96xf32> to vector<8x64xf32>
    %166 = vector.extract_strided_slice %164 {offsets = [0, 0], sizes = [8, 64], strides = [1, 1]} : vector<8x96xf32> to vector<8x64xf32>
    %167 = arith.addf %165, %166 : vector<8x64xf32>
    %168 = arith.negf %167 : vector<8x64xf32>
    %169 = math.exp %168 : vector<8x64xf32>
    %cst_23 = arith.constant 1.000000e+00 : f32
    %170 = vector.broadcast %cst_23 : f32 to vector<8x64xf32>
    %171 = arith.addf %170, %169 : vector<8x64xf32>
    %172 = arith.divf %170, %171 : vector<8x64xf32>
    %173 = vector.extract_strided_slice %172 {offsets = [0, 0], sizes = [8, 32], strides = [1, 1]} : vector<8x64xf32> to vector<8x32xf32>
    %174 = vector.extract_strided_slice %172 {offsets = [0, 32], sizes = [8, 32], strides = [1, 1]} : vector<8x64xf32> to vector<8x32xf32>
    %175 = vector.extract_strided_slice %163 {offsets = [0, 64], sizes = [8, 32], strides = [1, 1]} : vector<8x96xf32> to vector<8x32xf32>
    %176 = vector.extract_strided_slice %164 {offsets = [0, 64], sizes = [8, 32], strides = [1, 1]} : vector<8x96xf32> to vector<8x32xf32>
    %177 = arith.addf %176, %5 : vector<8x32xf32>
    %178 = arith.mulf %173, %177 : vector<8x32xf32>
    %179 = arith.addf %175, %178 : vector<8x32xf32>
    %180 = math.tanh %179 : vector<8x32xf32>
    %181 = arith.subf %162, %180 : vector<8x32xf32>
    %182 = arith.mulf %174, %181 : vector<8x32xf32>
    %183 = arith.addf %180, %182 : vector<8x32xf32>
    %184 = arith.mulf %183, %8 : vector<8x32xf32>
    %cst_24 = arith.constant dense<0.000000e+00> : vector<8xf32>
    %185 = vector.multi_reduction <add>, %184, %cst_24 [1] : vector<8x32xf32> to vector<8xf32>
    %186 = vector.shape_cast %185 : vector<8xf32> to vector<8x1xf32>
    %187 = vector.broadcast %9 : vector<1x1xf32> to vector<8x1xf32>
    %188 = arith.addf %186, %187 : vector<8x1xf32>
    %c0_25 = arith.constant 0 : index
    %c0_26 = arith.constant 0 : index
    %189 = vector.load %arg4[%c0_25, %c0_26] : memref<8x1xf32, #tpu.memory_space<vmem>>, vector<8x1xf32>
    tpu.vector_store %arg4[%c0_25, %c0_26], %188 {strides = array<i32>} : memref<8x1xf32, #tpu.memory_space<vmem>>, vector<8x1xf32>,
    return
  }
}

</mosaic_0001>

<bundles_post_ra>
// kernel: tpu_custom_call.1
= control target key start
LH: loop header
LB: loop body
LE: loop exit
PB: predicated region body
PF: predicated region fallthrough
CT: control target
= control target key end

     0   :  { %vm40_vm0 = vcmask 130048   ;;  %v1318_v0 = vmov 0.0|0.0   ;;  %vm1319_vm1 = vmmov 0   ;;  %v1320_v4 = vmov 0.0   ;;  %s1323_s6 = smov 32   ;;  %s1546_s1 = inlined_call_operand.vmem [shape: f32[16,96], index: 1, kind: input, shape index: {}]   ;;  %s1547_s2 = inlined_call_operand.vmem [shape: f32[32,96], index: 2, kind: input, shape index: {}]   ;;  %s1548_s0 = inlined_call_operand.vmem [shape: f32[64,16], index: 0, kind: input, shape index: {}]   ;;  %s1549_s3 = inlined_call_operand.vmem [shape: f32[2,96], index: 3, kind: input, shape index: {}]   ;;  %s1550_s4 = inlined_call_operand.vmem [shape: f32[8,1], index: 4, kind: output, shape index: {}]  }
   0x1   :  { %1216 = vmatprep.subr.bf16.mxu1 %v1318_v0  ;;  %v34_v1 = vld [vmem:[%s1546_s1] sm:$0xff]  ;;  %v35_v2 = vld [vmem:[%s1546_s1 + $0x8] sm:$0xff]  ;;  %1132 = vmatprep.mubr.msk.f32.mxu1 %vm1319_vm1, %v1320_v4  ;;  %v22_v5 = vlaneseq  ;;  %v19_v10 = vld [vmem:[%s1547_s2 + $0x10] sm:$0xff]  ;;  %vm170_vm2 = vcmask 261120   ;;  %vm1029_vm3 = vcmask 7168  }
   0x2   :  { %v17_v3 = vld [vmem:[%s1547_s2] sm:$0xff]  ;;  %v1212_v6 = vpack.c.bf16 %v35_v2, %v34_v1  ;;  %v18_v7 = vld [vmem:[%s1547_s2 + $0x8] sm:$0xff]  ;;  %v20_v11 = vld [vmem:[%s1547_s2 + $0x18] sm:$0xff]  ;;  %s1321_s2 = smov 64  }
   0x3   :  { %v26_v8 = vld [vmem:[%s1548_s0] sm:$0xff]  ;;  %v1367_v9 = vpack.c.bf16 %v18_v7, %v17_v3  ;;  %v23_v12 = vshrl.u32 %v22_v5, 7  ;;  %v27_v14 = vld [vmem:[%s1548_s0 + $0x8] sm:$0xff]  ;;  %v1383_v15 = vpack.c.bf16 %v20_v11, %v19_v10  ;;  %v28_v58 = vld [vmem:[%s1548_s0 + $0x10] sm:$0xff] }
   0x4   :  { %1112 = vmatprep.mubr.msk.f32.mxu0 %vm40_vm0, %v26_v8  ;;  %1213 = vmatprep.subr.bf16.mxu0 %v1212_v6  ;;  %v21_v13 = vld [vmem:[%s1549_s3] sm:$0x3]  ;;  %s1322_s3 = smov 96   ;;  %v29_v59 = vld [vmem:[%s1548_s0 + $0x18] sm:$0xff]  ;;  %v31_v61 = vld [vmem:[%s1548_s0 + $0x28] sm:$0xff] }
   0x5   :  { %1218 = vmatpush3.bf16.msra.mxu1 %v1367_v9  ;;  %1215 = vmatpush3.bf16.msra.mxu0 %v1212_v6  ;;  %v24_v16 = vsub.s32 1, %v23_v12  ;;  %v38_v17 = vsub.s32 0, %v23_v12  ;;  %v30_v60 = vld [vmem:[%s1548_s0 + $0x20] sm:$0xff]  ;;  %v32_v62 = vld [vmem:[%s1548_s0 + $0x30] sm:$0xff]  ;;  %v33_v63 = vld [vmem:[%s1548_s0 + $0x38] sm:$0xff] }
   0x6   :  { %1219 = vmatprep.subr.bf16.mxu1 %v1318_v0  ;;  %1228 = vmatprep.subr.bf16.mxu0 %v1318_v0 }
   0x7   :  { %v1387_v18 = vrot.slane %v21_v13, %v24_v16  ;;  %v1389_v19 = vrot.slane %v21_v13, %v38_v17 }
   0x8   :  { %1113 = vmatmul.mubr.msk.f32.vlgmr.msra.gmra.mrb[0].mxu0 %vm40_vm0, %v27_v14 }
   0x9   :  { %1221 = vmatpush3.bf16.msra.mxu1 %v1383_v15  ;;  %252 = vrot.lane.b32.xlu0 %v1387_v18, %s1321_s2 }
   0xa   :  { %1222 = vmatprep.subr.bf16.mxu1 %v1318_v0  ;;  %1230 = vmatpush3.bf16.msra.mxu0 %v1367_v9 }
   0xb   :  { %1231 = vmatprep.subr.bf16.mxu0 %v1318_v0  ;;  %1115 = vmatprep.mubr.msk.f32.mxu0 %vm40_vm0, %v28_v58 }
   0xc   :  { %1133 = vmatmul.mubr.f32.vlgmr.msra.gmra.mrb[0].mxu1 %v1320_v4  ;;  %1116 = vmatmul.mubr.msk.f32.gmra.mrb[2].mxu0 %vm40_vm0, %v29_v59 }
   0xd   :  { %1224 = vmatpush3.bf16.msra.mxu1 %v1367_v9  ;;  %1143 = vmatprep.mubr.msk.f32.mxu1 %vm1319_vm1, %v1320_v4 }
   0xe   :  { %1225 = vmatprep.subr.bf16.mxu1 %v1318_v0  ;;  %1233 = vmatpush3.bf16.msra.mxu0 %v1383_v15 }
   0xf   :  { %1240 = vmatprep.subr.bf16.mxu0 %v1318_v0  ;;  %1118 = vmatprep.mubr.msk.f32.mxu0 %vm40_vm0, %v30_v60 }
  0x10   :  { %1119 = vmatmul.mubr.msk.f32.gmra.mrb[4].mxu0 %vm40_vm0, %v31_v61 }
  0x11   :  { %1227 = vmatpush3.bf16.msra.mxu1 %v1383_v15  ;;  %1121 = vmatprep.mubr.msk.f32.mxu0 %vm40_vm0, %v32_v62 }
  0x12   :  { %1234 = vmatprep.subr.bf16.mxu1 %v1318_v0 }
  0x14   :  { %1122 = vmatmul.mubr.msk.f32.gmra.mrb[6].mxu0 %vm40_vm0, %v33_v63 }
  0x15   :  { %1154 = vmatprep.mubr.msk.f32.mxu0 %vm1319_vm1, %v1320_v4 }
  0x7b   :  { %v1407_v22 = vpop.permute.xlu0 %252 }
  0xdb   :  { %v1114_v20 = vpop.f32.mrb[0].mxu0 }
  0xdc   :  { %v131_v21 = vpop.f32.mrb[1].mxu0  ;;  %v137_v46 = vadd.f32 %v1114_v20, %v1389_v19 }
  0xdd   :  { %v132_v26 = vadd.f32 %v131_v21, %v1389_v19 }
  0xdf   :  { %v240_v23 = vpop.f32.mrb[0].mxu1  ;;  %v1117_v6 = vpop.f32.mrb[2].mxu0 }
  0xe0   :  { %v255_v24 = vadd.f32 %v1407_v22, %v240_v23  ;;  %v1134_v25 = vpop.f32.mrb[1].mxu1  ;;  %v244_v27 = vadd.f32 %v240_v23, %v132_v26  ;;  %v141_v7 = vpop.f32.mrb[3].mxu0 }
  0xe1   :  { %v142_v20 = vadd.f32 %v141_v7, %v1389_v19 }
  0xe2   :  { %257 = vrot.lane.b32.xlu0 %v255_v24, %s1321_s2  ;;  %v1043_v28 = vmul.f32 -1.442695, %v244_v27 }
  0xe3   :  { %v1456_v8 = vpop.f32.mrb[4].mxu0 }
  0xe4   :  { %1270 = vpow2.f32 %v1043_v28  ;;  %v1458_v10 = vpop.f32.mrb[5].mxu0 }
  0xe5   :  { %v152_v61 = vadd.f32 %v1458_v10, %v1389_v19 }
  0xe7   :  { %v1460_v11 = vpop.f32.mrb[6].mxu0 }
  0xe8   :  { %v1462_v12 = vpop.f32.mrb[7].mxu0 }
  0xee   :  { %v1271_v29 = vpop.eup %1270 }
  0xef   :  { %v248_v30 = vadd.f32 1.0, %v1271_v29 }
  0xf1   :  { %1272 = vrcp.f32 %v248_v30 }
  0xfb   :  { %v1273_v31 = vpop.eup %1272 }
 0x154   :  { %v258_v32 = vpop.permute.xlu0 %257 }
 0x155   :  { %v260_v33 = vmul.f32 %v1273_v31, %v258_v32 }
 0x157   :  { %262 = vrot.lane.b32.xlu1 %v260_v33, %s1321_s2 }
 0x1c9   :  { %v263_v34 = vpop.permute.xlu1 %262 }
 0x1ca   :  { %v265_v35 = vadd.f32 %v263_v34, %v132_v26 }
 0x1cc   :  { %1274 = vtanh.f32 %v265_v35 }
 0x1d6   :  { %v1275_v36 = vpop.eup %1274 }
 0x1d7   :  { %v267_v37 = vsub.f32 0.0, %v1275_v36 }
 0x1d9   :  { %269 = vrot.lane.b32.xlu1 %v267_v37, %s1322_s3 }
 0x24b   :  { %v270_v38 = vpop.permute.xlu1 %269 }
 0x24c   :  { %v272_v39 = vmul.f32 %v1273_v31, %v270_v38 }
 0x24e   :  { %274 = vrot.lane.b32.xlu0 %v272_v39, %s1323_s6 }
 0x2c0   :  { %v275_v40 = vpop.permute.xlu0 %274 }
 0x2c1   :  { %v277_v41 = vadd.f32 %v1275_v36, %v275_v40 }
 0x2c3   :  { %279 = vrot.lane.b32.xlu1 %v277_v41, %s1321_s2 }
 0x335   :  { %v280_v42 = vpop.permute.xlu1 %279 }
 0x336   :  { %1144 = vmatmul.mubr.msk.f32.vlgmr.msra.gmra.mrb[2].mxu1 %vm170_vm2, %v280_v42 }
 0x337   :  { %1236 = vmatpush3.bf16.msra.mxu1 %v1367_v9  ;;  %1165 = vmatprep.mubr.msk.f32.mxu1 %vm1319_vm1, %v1320_v4 }
 0x338   :  { %1237 = vmatprep.subr.bf16.mxu1 %v1318_v0 }
 0x33b   :  { %1239 = vmatpush3.bf16.msra.mxu1 %v1383_v15 }
 0x33c   :  { %1246 = vmatprep.subr.bf16.mxu1 %v1318_v0 }
 0x409   :  { %v349_v43 = vpop.f32.mrb[2].mxu1 }
 0x40a   :  { %v360_v44 = vadd.f32 %v349_v43, %v1407_v22  ;;  %v1145_v45 = vpop.f32.mrb[3].mxu1  ;;  %v353_v47 = vadd.f32 %v349_v43, %v137_v46 }
 0x40c   :  { %362 = vrot.lane.b32.xlu0 %v360_v44, %s1321_s2  ;;  %v1045_v48 = vmul.f32 -1.442695, %v353_v47 }
 0x40e   :  { %1276 = vpow2.f32 %v1045_v48 }
 0x418   :  { %v1277_v49 = vpop.eup %1276 }
 0x419   :  { %v357_v50 = vadd.f32 1.0, %v1277_v49 }
 0x41b   :  { %1278 = vrcp.f32 %v357_v50 }
 0x425   :  { %v1279_v51 = vpop.eup %1278 }
 0x47e   :  { %v363_v52 = vpop.permute.xlu0 %362 }
 0x47f   :  { %v365_v53 = vmul.f32 %v1279_v51, %v363_v52 }
 0x481   :  { %367 = vrot.lane.b32.xlu1 %v365_v53, %s1321_s2 }
 0x4f3   :  { %v368_v54 = vpop.permute.xlu1 %367 }
 0x4f4   :  { %v370_v55 = vadd.f32 %v368_v54, %v137_v46 }
 0x4f6   :  { %1280 = vtanh.f32 %v370_v55 }
 0x500   :  { %v1281_v56 = vpop.eup %1280 }
 0x501   :  { %v372_v57 = vsub.f32 %v277_v41, %v1281_v56  ;;  %v147_v41 = vadd.f32 %v1117_v6, %v1389_v19 }
 0x503   :  { %374 = vrot.lane.b32.xlu0 %v372_v57, %s1322_s3 }
 0x575   :  { %v375_v1 = vpop.permute.xlu0 %374 }
 0x576   :  { %v377_v2 = vmul.f32 %v1279_v51, %v375_v1 }
 0x578   :  { %379 = vrot.lane.b32.xlu1 %v377_v2, %s1323_s6 }
 0x5ea   :  { %v380_v3 = vpop.permute.xlu1 %379 }
 0x5eb   :  { %v382_v5 = vadd.f32 %v1281_v56, %v380_v3 }
 0x5ed   :  { %384 = vrot.lane.b32.xlu0 %v382_v5, %s1321_s2 }
 0x65f   :  { %v385_v13 = vpop.permute.xlu0 %384 }
 0x660   :  { %1155 = vmatmul.mubr.msk.f32.vlgmr.msra.gmra.mrb[8].mxu0 %vm170_vm2, %v385_v13 }
 0x661   :  { %1242 = vmatpush3.bf16.msra.mxu0 %v1367_v9  ;;  %1176 = vmatprep.mubr.msk.f32.mxu0 %vm1319_vm1, %v1320_v4 }
 0x662   :  { %1243 = vmatprep.subr.bf16.mxu0 %v1318_v0 }
 0x665   :  { %1245 = vmatpush3.bf16.msra.mxu0 %v1383_v15 }
 0x666   :  { %1252 = vmatprep.subr.bf16.mxu0 %v1318_v0 }
 0x733   :  { %v454_v14 = vpop.f32.mrb[8].mxu0 }
 0x734   :  { %v465_v16 = vadd.f32 %v454_v14, %v1407_v22  ;;  %v1156_v17 = vpop.f32.mrb[9].mxu0  ;;  %v458_v21 = vadd.f32 %v454_v14, %v142_v20 }
 0x736   :  { %467 = vrot.lane.b32.xlu1 %v465_v16, %s1321_s2  ;;  %v1047_v23 = vmul.f32 -1.442695, %v458_v21 }
 0x738   :  { %1282 = vpow2.f32 %v1047_v23 }
 0x742   :  { %v1283_v24 = vpop.eup %1282 }
 0x743   :  { %v462_v25 = vadd.f32 1.0, %v1283_v24 }
 0x745   :  { %1284 = vrcp.f32 %v462_v25 }
 0x74f   :  { %v1285_v26 = vpop.eup %1284 }
 0x7a8   :  { %v468_v27 = vpop.permute.xlu1 %467 }
 0x7a9   :  { %v470_v28 = vmul.f32 %v1285_v26, %v468_v27  ;;  %v157_v27 = vadd.f32 %v1456_v8, %v1389_v19 }
 0x7ab   :  { %472 = vrot.lane.b32.xlu0 %v470_v28, %s1321_s2 }
 0x81d   :  { %v473_v29 = vpop.permute.xlu0 %472 }
 0x81e   :  { %v475_v30 = vadd.f32 %v473_v29, %v142_v20 }
 0x820   :  { %1286 = vtanh.f32 %v475_v30 }
 0x82a   :  { %v1287_v31 = vpop.eup %1286 }
 0x82b   :  { %v477_v32 = vsub.f32 %v382_v5, %v1287_v31 }
 0x82d   :  { %479 = vrot.lane.b32.xlu1 %v477_v32, %s1322_s3 }
 0x89f   :  { %v480_v33 = vpop.permute.xlu1 %479 }
 0x8a0   :  { %v482_v34 = vmul.f32 %v1285_v26, %v480_v33 }
 0x8a2   :  { %484 = vrot.lane.b32.xlu0 %v482_v34, %s1323_s6 }
 0x914   :  { %v485_v35 = vpop.permute.xlu0 %484 }
 0x915   :  { %v487_v36 = vadd.f32 %v1287_v31, %v485_v35 }
 0x917   :  { %489 = vrot.lane.b32.xlu1 %v487_v36, %s1321_s2 }
 0x989   :  { %v490_v37 = vpop.permute.xlu1 %489 }
 0x98a   :  { %1166 = vmatmul.mubr.msk.f32.vlgmr.msra.gmra.mrb[4].mxu1 %vm170_vm2, %v490_v37 }
 0x98b   :  { %1248 = vmatpush3.bf16.msra.mxu1 %v1367_v9  ;;  %1187 = vmatprep.mubr.msk.f32.mxu1 %vm1319_vm1, %v1320_v4 }
 0x98c   :  { %1249 = vmatprep.subr.bf16.mxu1 %v1318_v0 }
 0x98f   :  { %1251 = vmatpush3.bf16.msra.mxu1 %v1383_v15 }
 0x990   :  { %1258 = vmatprep.subr.bf16.mxu1 %v1318_v0 }
 0xa5d   :  { %v559_v38 = vpop.f32.mrb[4].mxu1 }
 0xa5e   :  { %v570_v39 = vadd.f32 %v559_v38, %v1407_v22  ;;  %v1167_v40 = vpop.f32.mrb[5].mxu1  ;;  %v563_v42 = vadd.f32 %v559_v38, %v147_v41 }
 0xa60   :  { %572 = vrot.lane.b32.xlu0 %v570_v39, %s1321_s2  ;;  %v1049_v43 = vmul.f32 -1.442695, %v563_v42  ;;  %v162_v42 = vadd.f32 %v1462_v12, %v1389_v19 }
 0xa62   :  { %1288 = vpow2.f32 %v1049_v43 }
 0xa6c   :  { %v1289_v44 = vpop.eup %1288 }
 0xa6d   :  { %v567_v45 = vadd.f32 1.0, %v1289_v44 }
 0xa6f   :  { %1290 = vrcp.f32 %v567_v45 }
 0xa79   :  { %v1291_v46 = vpop.eup %1290 }
 0xad2   :  { %v573_v47 = vpop.permute.xlu0 %572 }
 0xad3   :  { %v575_v48 = vmul.f32 %v1291_v46, %v573_v47 }
 0xad5   :  { %577 = vrot.lane.b32.xlu1 %v575_v48, %s1321_s2 }
 0xb47   :  { %v578_v49 = vpop.permute.xlu1 %577 }
 0xb48   :  { %v580_v50 = vadd.f32 %v578_v49, %v147_v41 }
 0xb4a   :  { %1292 = vtanh.f32 %v580_v50 }
 0xb54   :  { %v1293_v51 = vpop.eup %1292 }
 0xb55   :  { %v582_v52 = vsub.f32 %v487_v36, %v1293_v51 }
 0xb57   :  { %584 = vrot.lane.b32.xlu0 %v582_v52, %s1322_s3 }
 0xbc9   :  { %v585_v53 = vpop.permute.xlu0 %584 }
 0xbca   :  { %v587_v54 = vmul.f32 %v1291_v46, %v585_v53 }
 0xbcc   :  { %589 = vrot.lane.b32.xlu1 %v587_v54, %s1323_s6 }
 0xc3e   :  { %v590_v55 = vpop.permute.xlu1 %589 }
 0xc3f   :  { %v592_v56 = vadd.f32 %v1293_v51, %v590_v55 }
 0xc41   :  { %594 = vrot.lane.b32.xlu0 %v592_v56, %s1321_s2 }
 0xcb3   :  { %v595_v57 = vpop.permute.xlu0 %594 }
 0xcb4   :  { %1177 = vmatmul.mubr.msk.f32.vlgmr.msra.gmra.mrb[10].mxu0 %vm170_vm2, %v595_v57 }
 0xcb5   :  { %1254 = vmatpush3.bf16.msra.mxu0 %v1367_v9  ;;  %1198 = vmatprep.mubr.msk.f32.mxu0 %vm1319_vm1, %v1320_v4 }
 0xcb6   :  { %1255 = vmatprep.subr.bf16.mxu0 %v1318_v0 }
 0xcb9   :  { %1257 = vmatpush3.bf16.msra.mxu0 %v1383_v15 }
 0xd87   :  { %v664_v58 = vpop.f32.mrb[10].mxu0 }
 0xd88   :  { %v675_v59 = vadd.f32 %v664_v58, %v1407_v22  ;;  %v1178_v60 = vpop.f32.mrb[11].mxu0  ;;  %v668_v62 = vadd.f32 %v664_v58, %v152_v61 }
 0xd8a   :  { %677 = vrot.lane.b32.xlu1 %v675_v59, %s1321_s2  ;;  %v1051_v63 = vmul.f32 -1.442695, %v668_v62 }
 0xd8c   :  { %1294 = vpow2.f32 %v1051_v63 }
 0xd96   :  { %v1295_v1 = vpop.eup %1294 }
 0xd97   :  { %v672_v2 = vadd.f32 1.0, %v1295_v1 }
 0xd99   :  { %1296 = vrcp.f32 %v672_v2 }
 0xda3   :  { %v1297_v3 = vpop.eup %1296 }
 0xdfc   :  { %v678_v5 = vpop.permute.xlu1 %677 }
 0xdfd   :  { %v680_v6 = vmul.f32 %v1297_v3, %v678_v5 }
 0xdff   :  { %682 = vrot.lane.b32.xlu0 %v680_v6, %s1321_s2 }
 0xe71   :  { %v683_v7 = vpop.permute.xlu0 %682 }
 0xe72   :  { %v685_v13 = vadd.f32 %v683_v7, %v152_v61  ;;  %v167_v61 = vadd.f32 %v1460_v11, %v1389_v19 }
 0xe74   :  { %1298 = vtanh.f32 %v685_v13 }
 0xe7e   :  { %v1299_v14 = vpop.eup %1298 }
 0xe7f   :  { %v687_v16 = vsub.f32 %v592_v56, %v1299_v14 }
 0xe81   :  { %689 = vrot.lane.b32.xlu1 %v687_v16, %s1322_s3 }
 0xef3   :  { %v690_v17 = vpop.permute.xlu1 %689 }
 0xef4   :  { %v692_v10 = vmul.f32 %v1297_v3, %v690_v17 }
 0xef6   :  { %694 = vrot.lane.b32.xlu0 %v692_v10, %s1323_s6 }
 0xf68   :  { %v695_v20 = vpop.permute.xlu0 %694 }
 0xf69   :  { %v697_v21 = vadd.f32 %v1299_v14, %v695_v20 }
 0xf6b   :  { %699 = vrot.lane.b32.xlu1 %v697_v21, %s1321_s2 }
 0xfdd   :  { %v700_v23 = vpop.permute.xlu1 %699 }
 0xfde   :  { %1188 = vmatmul.mubr.msk.f32.vlgmr.msra.gmra.mrb[6].mxu1 %vm170_vm2, %v700_v23 }
 0xfdf   :  { %1260 = vmatpush3.bf16.msra.mxu1 %v1367_v9  ;;  %1209 = vmatprep.mubr.msk.f32.mxu1 %vm1319_vm1, %v1320_v4 }
 0xfe0   :  { %1261 = vmatprep.subr.bf16.mxu1 %v1318_v0 }
 0xfe3   :  { %1263 = vmatpush3.bf16.msra.mxu1 %v1383_v15 }
0x10b1   :  { %v769_v24 = vpop.f32.mrb[6].mxu1 }
0x10b2   :  { %v780_v25 = vadd.f32 %v769_v24, %v1407_v22  ;;  %v1189_v26 = vpop.f32.mrb[7].mxu1  ;;  %v773_v28 = vadd.f32 %v769_v24, %v157_v27 }
0x10b4   :  { %782 = vrot.lane.b32.xlu0 %v780_v25, %s1321_s2  ;;  %v1053_v29 = vmul.f32 -1.442695, %v773_v28 }
0x10b6   :  { %1300 = vpow2.f32 %v1053_v29 }
0x10c0   :  { %v1301_v9 = vpop.eup %1300 }
0x10c1   :  { %v777_v30 = vadd.f32 1.0, %v1301_v9 }
0x10c3   :  { %1302 = vrcp.f32 %v777_v30 }
0x10cd   :  { %v1303_v4 = vpop.eup %1302 }
0x1126   :  { %v783_v31 = vpop.permute.xlu0 %782 }
0x1127   :  { %v785_v0 = vmul.f32 %v1303_v4, %v783_v31 }
0x1129   :  { %787 = vrot.lane.b32.xlu1 %v785_v0, %s1321_s2 }
0x119b   :  { %v788_v15 = vpop.permute.xlu1 %787 }
0x119c   :  { %v790_v32 = vadd.f32 %v788_v15, %v157_v27 }
0x119e   :  { %1304 = vtanh.f32 %v790_v32 }
0x11a8   :  { %v1305_v33 = vpop.eup %1304 }
0x11a9   :  { %v792_v34 = vsub.f32 %v697_v21, %v1305_v33 }
0x11ab   :  { %794 = vrot.lane.b32.xlu0 %v792_v34, %s1322_s3 }
0x121d   :  { %v795_v35 = vpop.permute.xlu0 %794 }
0x121e   :  { %v797_v8 = vmul.f32 %v1303_v4, %v795_v35 }
0x1220   :  { %799 = vrot.lane.b32.xlu1 %v797_v8, %s1323_s6 }
0x1292   :  { %v800_v36 = vpop.permute.xlu1 %799 }
0x1293   :  { %v802_v37 = vadd.f32 %v1305_v33, %v800_v36 }
0x1295   :  { %804 = vrot.lane.b32.xlu0 %v802_v37, %s1321_s2 }
0x1307   :  { %v805_v38 = vpop.permute.xlu0 %804 }
0x1308   :  { %1199 = vmatmul.mubr.msk.f32.vlgmr.msra.gmra.mrb[12].mxu0 %vm170_vm2, %v805_v38 }
0x13db   :  { %v874_v39 = vpop.f32.mrb[12].mxu0 }
0x13dc   :  { %v885_v40 = vadd.f32 %v874_v39, %v1407_v22  ;;  %v1200_v41 = vpop.f32.mrb[13].mxu0  ;;  %v878_v43 = vadd.f32 %v874_v39, %v162_v42 }
0x13de   :  { %887 = vrot.lane.b32.xlu1 %v885_v40, %s1321_s2  ;;  %v1055_v44 = vmul.f32 -1.442695, %v878_v43 }
0x13e0   :  { %1306 = vpow2.f32 %v1055_v44 }
0x13ea   :  { %v1307_v45 = vpop.eup %1306 }
0x13eb   :  { %v882_v46 = vadd.f32 1.0, %v1307_v45 }
0x13ed   :  { %1308 = vrcp.f32 %v882_v46 }
0x13f7   :  { %v1309_v47 = vpop.eup %1308 }
0x1450   :  { %v888_v48 = vpop.permute.xlu1 %887 }
0x1451   :  { %v890_v49 = vmul.f32 %v1309_v47, %v888_v48 }
0x1453   :  { %892 = vrot.lane.b32.xlu0 %v890_v49, %s1321_s2 }
0x14c5   :  { %v893_v50 = vpop.permute.xlu0 %892 }
0x14c6   :  { %v895_v51 = vadd.f32 %v893_v50, %v162_v42 }
0x14c8   :  { %1310 = vtanh.f32 %v895_v51 }
0x14d2   :  { %v1311_v52 = vpop.eup %1310 }
0x14d3   :  { %v897_v53 = vsub.f32 %v802_v37, %v1311_v52 }
0x14d5   :  { %899 = vrot.lane.b32.xlu1 %v897_v53, %s1322_s3 }
0x1547   :  { %v900_v54 = vpop.permute.xlu1 %899 }
0x1548   :  { %v902_v12 = vmul.f32 %v1309_v47, %v900_v54 }
0x154a   :  { %904 = vrot.lane.b32.xlu0 %v902_v12, %s1323_s6 }
0x15bc   :  { %v905_v55 = vpop.permute.xlu0 %904 }
0x15bd   :  { %v907_v56 = vadd.f32 %v1311_v52, %v905_v55 }
0x15bf   :  { %909 = vrot.lane.b32.xlu1 %v907_v56, %s1321_s2 }
0x1631   :  { %v910_v57 = vpop.permute.xlu1 %909 }
0x1632   :  { %1210 = vmatmul.mubr.msk.f32.vlgmr.msra.gmra.mrb[8].mxu1 %vm170_vm2, %v910_v57 }
0x1705   :  { %v979_v58 = vpop.f32.mrb[8].mxu1 }
0x1706   :  { %v990_v59 = vadd.f32 %v979_v58, %v1407_v22  ;;  %v1211_v60 = vpop.f32.mrb[9].mxu1  ;;  %v983_v62 = vadd.f32 %v979_v58, %v167_v61 }
0x1708   :  { %992 = vrot.lane.b32.xlu0 %v990_v59, %s1321_s2  ;;  %v1057_v63 = vmul.f32 -1.442695, %v983_v62 }
0x170a   :  { %1312 = vpow2.f32 %v1057_v63 }
0x1714   :  { %v1313_v1 = vpop.eup %1312 }
0x1715   :  { %v987_v2 = vadd.f32 1.0, %v1313_v1 }
0x1717   :  { %1314 = vrcp.f32 %v987_v2 }
0x1721   :  { %v1315_v3 = vpop.eup %1314 }
0x177a   :  { %v993_v5 = vpop.permute.xlu0 %992 }
0x177b   :  { %v995_v6 = vmul.f32 %v1315_v3, %v993_v5 }
0x177d   :  { %997 = vrot.lane.b32.xlu1 %v995_v6, %s1321_s2 }
0x17ef   :  { %v998_v7 = vpop.permute.xlu1 %997 }
0x17f0   :  { %v1000_v13 = vadd.f32 %v998_v7, %v167_v61 }
0x17f2   :  { %1316 = vtanh.f32 %v1000_v13 }
0x17fc   :  { %v1317_v22 = vpop.eup %1316 }
0x17fd   :  { %v1002_v14 = vsub.f32 %v907_v56, %v1317_v22 }
0x17ff   :  { %1004 = vrot.lane.b32.xlu0 %v1002_v14, %s1322_s3 }
0x1803   :  { %1013 = vrot.lane.b32.xlu0 %v1387_v18, %s1323_s6 }
0x1871   :  { %v1005_v19 = vpop.permute.xlu0 %1004 }
0x1872   :  { %v1007_v11 = vmul.f32 %v1315_v3, %v1005_v19 }
0x1874   :  { %1009 = vrot.lane.b32.xlu1 %v1007_v11, %s1323_s6 }
0x1875   :  { %v1014_v17 = vpop.permute.xlu0 %1013 }
0x18e6   :  { %v1010_v16 = vpop.permute.xlu1 %1009 }
0x18e7   :  { %v1012_v10 = vadd.f32 %v1317_v22, %v1010_v16 }
0x18e9   :  { %v1016_v20 = vmul.f32 %v1014_v17, %v1012_v10 }
0x18eb   :  { %1018 = vrot.lane.b32.xlu1 %v1016_v20, %s1321_s2 }
0x195d   :  { %v1019_v21 = vpop.permute.xlu1 %1018 }
0x195e   :  { %v1021_v23 = vsel %vm170_vm2, %v1019_v21, 0.0 }
0x195f   :  { %1022 = vadd.xlane.f32.xlu0 %v1021_v23 }
0x19ec   :  { %v1023_v24 = vpop.xlane.xlu0 %1022 }
0x19ed   :  { %v1024_v25 = vadd.f32 %v1023_v24, %v1387_v18 }
0x19ef   :  { %1026 = vrot.lane.b32.xlu1 %v1024_v25, %s1321_s2 }
0x1a61   :  { %v1027_v26 = vpop.permute.xlu1 %1026 }
0x1a62   :  { %1030 = vst.msk [vmem:[%s1550_s4] sm:$0xff] %vm1029_vm3, %v1027_v26 }

</bundles_post_ra>
